<compile_context>
chip_gen: v6e
topology: v6e:2x2x1
jax: 0.10.0
libtpu: 0.0.40
codegen_flags: <defaults>
</compile_context>

<pallas_src>
import jax
import jax.numpy as jnp
from jax.experimental import pallas as pl
from jax.experimental.pallas import tpu as pltpu

QMIN = 0
QMAX = 255
_LANE = 128
_SUBLANE = 8
_MAX_BLOCK_ROWS = 512  # 512x128 f32 = 256 KiB / block; double-buffered in+out ~1 MiB -> fits v5e/v6e/v7x


def _round_up(a, b):
    return (a + b - 1) // b * b


# ----------------------------------------------------------------------------
# Kernel 1: per-block min / max partials (observer statistics hot path)
# ----------------------------------------------------------------------------
def _minmax_kernel(x_ref, min_ref, max_ref):
    xt = x_ref[...].astype(jnp.float32)            # (block_rows, 128)
    xr = xt.reshape(-1, _SUBLANE, _LANE)           # group whole (8,128) tiles -> no layout cross
    # Reduce over the leading (untiled) axis: pure VPU elementwise min/max chains.
    min_ref[0] = jnp.min(xr, axis=0)               # (8, 128) partial
    max_ref[0] = jnp.max(xr, axis=0)


def _minmax_partials(x2d, block_rows):
    rows, cols = x2d.shape
    assert cols == _LANE and rows % block_rows == 0 and block_rows % _SUBLANE == 0
    n_blocks = rows // block_rows
    pmin, pmax = pl.pallas_call(
        _minmax_kernel,
        out_shape=(
            jax.ShapeDtypeStruct((n_blocks, _SUBLANE, _LANE), jnp.float32),
            jax.ShapeDtypeStruct((n_blocks, _SUBLANE, _LANE), jnp.float32),
        ),
        grid_spec=pltpu.PrefetchScalarGridSpec(
            num_scalar_prefetch=0,
            grid=(n_blocks,),
            in_specs=[pl.BlockSpec((block_rows, _LANE), lambda i: (i, 0))],
            out_specs=(
                pl.BlockSpec((1, _SUBLANE, _LANE), lambda i: (i, 0, 0)),
                pl.BlockSpec((1, _SUBLANE, _LANE), lambda i: (i, 0, 0)),
            ),
        ),
        compiler_params=pltpu.CompilerParams(
            dimension_semantics=("parallel",)
        ),
    )(x2d)
    return pmin, pmax


# ----------------------------------------------------------------------------
# Kernel 2: per-tensor affine fake quantization (elementwise hot path)
# ----------------------------------------------------------------------------
def _fake_quant_kernel(inv_scale_ref, scale_ref, zp_ref, x_ref, o_ref):
    x = x_ref[...].astype(jnp.float32)
    inv_s = inv_scale_ref[0, 0]
    s = scale_ref[0, 0]
    zp = zp_ref[0, 0]
    q = jnp.clip(jnp.round(x * inv_s + zp), float(QMIN), float(QMAX))
    o_ref[...] = ((q - zp) * s).astype(o_ref.dtype)


def _fake_quantize(x2d, inv_scale, scale, zero_point, block_rows):
    rows, cols = x2d.shape
    assert cols == _LANE and rows % block_rows == 0
    inv_s = jnp.asarray(inv_scale, jnp.float32).reshape(1, 1)
    scale_s = jnp.asarray(scale, jnp.float32).reshape(1, 1)
    zp_s = jnp.asarray(zero_point, jnp.float32).reshape(1, 1)
    return pl.pallas_call(
        _fake_quant_kernel,
        out_shape=jax.ShapeDtypeStruct((rows, cols), x2d.dtype),
        grid_spec=pltpu.PrefetchScalarGridSpec(
            num_scalar_prefetch=0,
            grid=(rows // block_rows,),
            in_specs=[
                pl.BlockSpec(memory_space=pltpu.MemorySpace.SMEM),
                pl.BlockSpec(memory_space=pltpu.MemorySpace.SMEM),
                pl.BlockSpec(memory_space=pltpu.MemorySpace.SMEM),
                pl.BlockSpec((block_rows, _LANE), lambda i: (i, 0)),
            ],
            out_specs=pl.BlockSpec((block_rows, _LANE), lambda i: (i, 0)),
        ),
        compiler_params=pltpu.CompilerParams(
            dimension_semantics=("parallel",)
        ),
    )(inv_s, scale_s, zp_s, x2d)


# ----------------------------------------------------------------------------
# Module-equivalent wrapper
# ----------------------------------------------------------------------------
class FakeQuantizePallas:
    """JAX/Pallas equivalent of nncs FakeQuantizeBase with canonical
    MinMax-observer + per-tensor-affine fake-quant forward semantics."""

    def __init__(self):
        # buffers from FakeQuantizeBase.__init__ (kept for API fidelity)
        self.fake_quant_enabled = jnp.array([1], dtype=jnp.uint8)
        self.observer_enabled = jnp.array([1], dtype=jnp.uint8)
        self.observer_opened = jnp.array([1], dtype=jnp.uint8)
        # Python-side flags (avoid device->host syncs in forward)
        self._fq_on = True
        self._obs_on = True
        self._obs_open = True
        # observer running statistics (deterministic init)
        self.min_val = jnp.array(jnp.inf, dtype=jnp.float32)
        self.max_val = jnp.array(-jnp.inf, dtype=jnp.float32)
        self.quant_min = QMIN
        self.quant_max = QMAX
        self.eps = jnp.float32(jnp.finfo(jnp.float32).eps)

    # --- buffer toggles (same API as the torch module) ---
    def enable_fake_quant(self, enabled=True):
        self._fq_on = bool(enabled)
        self.fake_quant_enabled = jnp.array([1 if enabled else 0], jnp.uint8)

    def disable_fake_quant(self):
        self.enable_fake_quant(False)

    def enable_observer(self, enabled=True):
        self._obs_on = bool(enabled)
        self.observer_enabled = jnp.array([1 if enabled else 0], jnp.uint8)

    def disable_observer(self):
        self.enable_observer(False)

    def open_observer(self, enabled=True):
        self._obs_open = bool(enabled)
        self.observer_opened = jnp.array([1 if enabled else 0], jnp.uint8)

    def close_observer(self):
        self.open_observer(False)

    # --- qparams from collected statistics ---
    def calculate_qparams(self):
        # force the quant range to include zero (standard affine observer rule)
        min_v = jnp.minimum(self.min_val, 0.0)
        max_v = jnp.maximum(self.max_val, 0.0)
        scale = (max_v - min_v) / float(self.quant_max - self.quant_min)
        scale = jnp.maximum(scale, self.eps)
        zero_point = self.quant_min - jnp.round(min_v / scale)
        zero_point = jnp.clip(zero_point, self.quant_min, self.quant_max)
        return scale.astype(jnp.float32), zero_point.astype(jnp.float32)

    # --- forward ---
    def __call__(self, x):
        orig_shape = x.shape
        orig_dtype = x.dtype
        flat = x.reshape(-1)                  # keep HBM I/O in the original dtype
        n = flat.shape[0]

        # tiling: lane-dense 2-D slab [rows, 128], block_rows adapted to tensor size
        rows_needed = -(-n // _LANE)
        rows8 = _round_up(max(rows_needed, 1), _SUBLANE)
        block_rows = min(_MAX_BLOCK_ROWS, rows8)
        rows = _round_up(rows8, block_rows)
        pad = rows * _LANE - n
        if pad:
            # single pad, reused by both kernels; 'edge' replication is min/max-neutral
            flat = jnp.pad(flat, (0, pad), mode="edge")
        x2d = flat.reshape(rows, _LANE)

        # observer statistics update (Pallas per-block partial reduction + tiny JAX finish)
        if self._obs_on and self._obs_open:
            pmin, pmax = _minmax_partials(x2d, block_rows)
            self.min_val = jnp.minimum(self.min_val, jnp.min(pmin))
            self.max_val = jnp.maximum(self.max_val, jnp.max(pmax))

        # fake quantization (Pallas elementwise kernel)
        if self._fq_on:
            scale, zero_point = self.calculate_qparams()
            inv_scale = 1.0 / scale
            y2d = _fake_quantize(x2d, inv_scale, scale, zero_point, block_rows)
            y = y2d.reshape(-1)
            if pad:
                y = y[:n]
            return y.reshape(orig_shape).astype(orig_dtype)
        return x


# ----------------------------------------------------------------------------
# Reference (pure JAX) for a sanity check
# ----------------------------------------------------------------------------
def _ref_fake_quant(x):
    xf = x.astype(jnp.float32)
    mn = jnp.minimum(jnp.min(xf), 0.0)
    mx = jnp.maximum(jnp.max(xf), 0.0)
    scale = jnp.maximum((mx - mn) / float(QMAX - QMIN), jnp.finfo(jnp.float32).eps)
    zp = jnp.clip(QMIN - jnp.round(mn / scale), QMIN, QMAX)
    q = jnp.clip(jnp.round(xf * (1.0 / scale) + zp), QMIN, QMAX)
    return ((q - zp) * scale).astype(x.dtype)


if __name__ == "__main__":
    key = jax.random.PRNGKey(0)
    k1, k2 = jax.random.split(key)

    # NCHW activation, multiple-of-128 element count (no padding path)
    x = jax.random.normal(k1, (2, 4, 16, 16), dtype=jnp.float32)
    fq = FakeQuantizePallas()
    y = jax.block_until_ready(fq(x))
    y_ref = _ref_fake_quant(x)
    assert y.shape == x.shape and y.dtype == x.dtype
    assert jnp.max(jnp.abs(y - y_ref)) < 1e-5
    # observer stats should match the true min/max
    assert jnp.abs(fq.min_val - jnp.min(x)) < 1e-6
    assert jnp.abs(fq.max_val - jnp.max(x)) < 1e-6

    # ragged element count (exercises single edge-pad path)
    x2 = jax.random.normal(k2, (2, 3, 5, 7), dtype=jnp.float32)
    fq2 = FakeQuantizePallas()
    y2 = jax.block_until_ready(fq2(x2))
    y2_ref = _ref_fake_quant(x2)
    assert y2.shape == x2.shape and y2.dtype == x2.dtype
    assert jnp.max(jnp.abs(y2 - y2_ref)) < 1e-5

    # exercise buffer toggles (observer off, fake-quant off -> identity)
    fq.disable_observer()
    fq.disable_fake_quant()
    y_id = jax.block_until_ready(fq(x))
    assert jnp.array_equal(y_id, x)

    print("KERNEL_OK")
</pallas_src>

<mosaic_0001>
module attributes {stable_mosaic.version = 11 : i64} {
  func.func @_minmax_kernel(%arg0: i32, %arg1: memref<16x128xf32, #tpu.memory_space<vmem>>, %arg2: memref<1x8x128xf32, #tpu.memory_space<vmem>>, %arg3: memref<1x8x128xf32, #tpu.memory_space<vmem>>) attributes {dimension_semantics = [#tpu.dimension_semantics<parallel>], iteration_bounds = array<i64: 1>, scalar_prefetch = 0 : i64, scratch_operands = 0 : i64, tpu.core_type = #tpu.core_type<tc>, window_params = [{transform_indices = @transform_0, window_bounds = array<i64: 16, 128>}, {transform_indices = @transform_1, window_bounds = array<i64: 1, 8, 128>}, {transform_indices = @transform_2, window_bounds = array<i64: 1, 8, 128>}]} {
    %c0 = arith.constant 0 : index
    %c0_0 = arith.constant 0 : index
    %0 = vector.load %arg1[%c0, %c0_0] : memref<16x128xf32, #tpu.memory_space<vmem>>, vector<16x128xf32>
    %1 = vector.shape_cast %0 : vector<16x128xf32> to vector<2x8x128xf32>
    %cst = arith.constant dense<0x7F800000> : vector<8x128xf32>
    %2 = vector.multi_reduction <minimumf>, %1, %cst [0] : vector<2x8x128xf32> to vector<8x128xf32>
    %c0_1 = arith.constant 0 : index
    %c0_2 = arith.constant 0 : index
    %c0_3 = arith.constant 0 : index
    %3 = vector.load %arg2[%c0_1, %c0_2, %c0_3] : memref<1x8x128xf32, #tpu.memory_space<vmem>>, vector<1x8x128xf32>
    %4 = vector.shape_cast %3 : vector<1x8x128xf32> to vector<8x128xf32>
    %5 = vector.shape_cast %2 : vector<8x128xf32> to vector<1x8x128xf32>
    tpu.vector_store %arg2[%c0_1, %c0_2, %c0_3], %5 {strides = array<i32>} : memref<1x8x128xf32, #tpu.memory_space<vmem>>, vector<1x8x128xf32>,
    %cst_4 = arith.constant dense<0xFF800000> : vector<8x128xf32>
    %6 = vector.multi_reduction <maximumf>, %1, %cst_4 [0] : vector<2x8x128xf32> to vector<8x128xf32>
    %c0_5 = arith.constant 0 : index
    %c0_6 = arith.constant 0 : index
    %c0_7 = arith.constant 0 : index
    %7 = vector.load %arg3[%c0_5, %c0_6, %c0_7] : memref<1x8x128xf32, #tpu.memory_space<vmem>>, vector<1x8x128xf32>
    %8 = vector.shape_cast %7 : vector<1x8x128xf32> to vector<8x128xf32>
    %9 = vector.shape_cast %6 : vector<8x128xf32> to vector<1x8x128xf32>
    tpu.vector_store %arg3[%c0_5, %c0_6, %c0_7], %9 {strides = array<i32>} : memref<1x8x128xf32, #tpu.memory_space<vmem>>, vector<1x8x128xf32>,
    return
  }
  func.func @transform_0(%arg0: i32) -> (i32, i32) {
    %c0_i32 = arith.constant 0 : i32
    %c0_i32_0 = arith.constant 0 : i32
    return %arg0, %c0_i32 : i32, i32
  }
  func.func @transform_1(%arg0: i32) -> (i32, i32, i32) {
    %c0_i32 = arith.constant 0 : i32
    %c0_i32_0 = arith.constant 0 : i32
    %c0_i32_1 = arith.constant 0 : i32
    return %arg0, %c0_i32, %c0_i32_0 : i32, i32, i32
  }
  func.func @transform_2(%arg0: i32) -> (i32, i32, i32) {
    %c0_i32 = arith.constant 0 : i32
    %c0_i32_0 = arith.constant 0 : i32
    %c0_i32_1 = arith.constant 0 : i32
    return %arg0, %c0_i32, %c0_i32_0 : i32, i32, i32
  }
}

</mosaic_0001>

<bundles_post_ra>
// kernel: tpu_custom_call.1
= control target key start
LH: loop header
LB: loop body
LE: loop exit
PB: predicated region body
PF: predicated region fallthrough
CT: control target
= control target key end

     0   :  { %8 = vsyncpa [#allocation3], 0  ;;  %s161_s0 = inlined_call_operand.hbm [shape: f32[16,128], index: 0, kind: input, shape index: {}]   ;;  %s162_s1 = inlined_call_operand.hbm [shape: f32[1,8,128], index: 1, kind: output, shape index: {0}]   ;;  %s163_s2 = inlined_call_operand.hbm [shape: f32[1,8,128], index: 2, kind: output, shape index: {1}]  }
   0x1   :  { %9 = vsyncpa [#allocation4], 0 }
   0x2   :  { %10 = vsyncpa [#allocation7], 0  ;;  %s132_s9 = smov [#allocation2]  }
   0x3   :  { %s16_s10 = sshll.u32 %s132_s9, 4  ;;  %s17_s10 = int_to_ptr.vmem [resolvable:$true] %s16_s10 }
   0x4   :  { %s74_s11 = scalar_lea.vmem %s17_s10, 256  ;;  %p79_p1 = scmp.lt.s32.totalorder %s17_s10, %s17_s10 }
   0x5   :  { %p75_p0 = scmp.ne.s32.totalorder %s17_s10, %s74_s11  ;;  %p80_p2 = scmp.lt.s32.totalorder %s74_s11, %s74_s11 }
   0x7   :  { %p81_p3 = por %p80_p2, %p79_p1 }
   0x9   :  { %p82_p4 = pnand %p81_p3, %p75_p0 }
   0xb   :  { %85 = shalt.err (!%p82_p4)
}
   0xc   :  { %s133_s12 = smov 128   ;;  %s134_s13 = smov 8  }
   0xd   :  { %22 = dma.hbm_to_vmem [thread:$0]  %s161_s0, 256, %s17_s10, [#allocation3], %s133_s12, %s133_s12, %s134_s13  }
   0xe   :  { %126 = dma.done.wait [#allocation3], 256  }
   0xf   :  { %127 = vsyncadd [#allocation3], 4294967040  ;;  %s135_s16 = smov [#allocation5]   ;;  %s136_s18 = smov [#allocation6]   ;;  %v26_v0 = vld [vmem:[#allocation2] sm:$0xff]  ;;  %v27_v1 = vld [vmem:[#allocation2 + $0x8] sm:$0xff] }
  0x10   :  { %s38_s17 = sshll.u32 %s135_s16, 4  ;;  %s48_s19 = sshll.u32 %s136_s18, 4  ;;  %v28_v2 = vmin.f32 %v26_v0, %v27_v1  ;;  %v30_v3 = vmax.f32 %v26_v0, %v27_v1  ;;  %s39_s17 = int_to_ptr.vmem [resolvable:$true] %s38_s17  ;;  %s49_s19 = int_to_ptr.vmem [resolvable:$true] %s48_s19 }
  0x11   :  { %s86_s20 = scalar_lea.vmem %s39_s17, 128  ;;  %p91_p6 = scmp.lt.s32.totalorder %s39_s17, %s39_s17 }
  0x12   :  { %29 = vst [vmem:[#allocation5] sm:$0xff] %v28_v2  ;;  %31 = vst [vmem:[#allocation6] sm:$0xff] %v30_v3  ;;  %p87_p5 = scmp.ne.s32.totalorder %s39_s17, %s86_s20  ;;  %p92_p7 = scmp.lt.s32.totalorder %s86_s20, %s86_s20 }
  0x14   :  { %p93_p8 = por %p92_p7, %p91_p6 }
  0x16   :  { %p94_p9 = pnand %p93_p8, %p87_p5 }
  0x18   :  { %97 = shalt.err (!%p94_p9)
}
  0x19   :  { %41 = dma.vmem_to_hbm [thread:$0]  %s39_s17, 128, %s162_s1, [#allocation4]  }
  0x1a   :  { %s106_s22 = scalar_lea.vmem %s49_s19, 128  ;;  %p111_p11 = scmp.lt.s32.totalorder %s49_s19, %s49_s19 }
  0x1b   :  { %p107_p10 = scmp.ne.s32.totalorder %s49_s19, %s106_s22  ;;  %p112_p12 = scmp.lt.s32.totalorder %s106_s22, %s106_s22 }
  0x1d   :  { %p113_p13 = por %p112_p12, %p111_p11 }
  0x1f   :  { %p114_p0 = pnand %p113_p13, %p107_p10 }
  0x21   :  { %117 = shalt.err (!%p114_p0)
}
  0x22   :  { %51 = dma.vmem_to_hbm [thread:$0]  %s49_s19, 128, %s163_s2, [#allocation7]  }
  0x23   :  { %128 = dma.done.wait [#allocation4], 128  }
  0x24   :  { %129 = vsyncadd [#allocation4], 4294967168 }
  0x25   :  { %130 = dma.done.wait [#allocation7], 128  }
  0x26   :  { %131 = vsyncadd [#allocation7], 4294967168 }
  0x27   :  { %58 = vsyncpa [#allocation3], 1 }
  0x28   :  { %59 = vsyncpa [#allocation4], 1 }
  0x29   :  { %60 = vsyncpa [#allocation7], 1 }

</bundles_post_ra>
